<compile_context>
chip_gen: v7x
topology: tpu7x:2x2x1
jax: 0.10.0
libtpu: 0.0.40
codegen_flags: <defaults>
</compile_context>

<pallas_src>
import functools

import jax
import jax.numpy as jnp
from jax.experimental import pallas as pl
from jax.experimental.pallas import tpu as pltpu

_MAX_TILE_C = 8192  # lanes per class tile before switching to the online-LSE class loop


def _smooth_ce_kernel(x_ref, t_ref, out_ref, m_sc, s_sc, w_sc, *,
                      alpha, num_classes, batch, grid_c,
                      needs_c_mask, needs_b_mask):
    # x_ref:   (TILE_B, TILE_C) native dtype (bf16/f32), VMEM
    # t_ref:   (TILE_B, 1) int32, VMEM
    # out_ref: (8, 1) f32 — per-batch-tile partial loss sum in row 0
    # m/s/w_sc: (TILE_B, 1) f32 scratch (online LSE state; used when grid_c > 1)
    i = pl.program_id(0)               # batch-tile index  ("parallel")
    j = pl.program_id(1)               # class-tile index  ("arbitrary", innermost)
    tb, tc = x_ref.shape

    x = x_ref[...].astype(jnp.float32)                              # (TB, TC)
    t = t_ref[...]                                                  # (TB, 1)

    # Global class ids of this tile's lanes.
    cls = jax.lax.broadcasted_iota(jnp.int32, (tb, tc), 1) + j * tc

    # Smoothed-label weights folded into a single reduce:
    #   loss_b = (m + lse) - sum_c w * x,   w = alpha/C + (1-alpha)*[c == t]
    w_hit = (1.0 - alpha) + alpha / num_classes
    w_miss = alpha / num_classes
    w = jnp.where(cls == t, jnp.float32(w_hit), jnp.float32(w_miss))

    if needs_c_mask:                    # ragged last class tile (static specialization)
        lane_valid = cls < num_classes
        x_exp = jnp.where(lane_valid, x, -jnp.inf)   # pad lanes: exp -> 0, max unaffected
        x_w = jnp.where(lane_valid, x, 0.0)          # pad lanes: w*x -> 0
    else:
        x_exp = x
        x_w = x

    tile_max = jnp.max(x_exp, axis=-1, keepdims=True)               # (TB, 1)
    tile_wsum = jnp.sum(w * x_w, axis=-1, keepdims=True)            # (TB, 1)

    def _write_tile_sum(row_loss):
        # row_loss: (TB, 1).  Zero ragged tail rows, then store one partial
        # sum per batch tile (single small store instead of a per-row column).
        if needs_b_mask:
            rows = jax.lax.broadcasted_iota(jnp.int32, row_loss.shape, 0) + i * tb
            row_loss = jnp.where(rows < batch, row_loss, 0.0)
        tile_sum = jnp.sum(row_loss)
        slot = jax.lax.broadcasted_iota(jnp.int32, (8, 1), 0)
        out_ref[...] = jnp.where(slot == 0, tile_sum, 0.0)

    if grid_c == 1:
        # Single class block: direct, no online rescaling needed.
        s = jnp.sum(jnp.exp(x_exp - tile_max), axis=-1, keepdims=True)
        _write_tile_sum(tile_max + jnp.log(s) - tile_wsum)
    else:
        # Flash-style online logsumexp / weighted-sum across class tiles.
        @pl.when(j == 0)
        def _():
            m_sc[...] = jnp.full(m_sc.shape, -jnp.inf, jnp.float32)
            s_sc[...] = jnp.zeros(s_sc.shape, jnp.float32)
            w_sc[...] = jnp.zeros(w_sc.shape, jnp.float32)

        m_prev = m_sc[...]
        m_new = jnp.maximum(m_prev, tile_max)
        s_sc[...] = (s_sc[...] * jnp.exp(m_prev - m_new)
                     + jnp.sum(jnp.exp(x_exp - m_new), axis=-1, keepdims=True))
        w_sc[...] = w_sc[...] + tile_wsum
        m_sc[...] = m_new

        @pl.when(j == grid_c - 1)
        def _():
            _write_tile_sum(m_sc[...] + jnp.log(s_sc[...]) - w_sc[...])


def _choose_tiles(batch, num_classes, itemsize, vmem_cap_bytes):
    """Byte-budgeted, generation-aware tile sizes.

    Counts the double-buffered input tile plus ~6 f32 (tile_b, tile_c)
    temporaries from the upcast / iota / mask / exp / weighted-reduce chain.
    """
    if vmem_cap_bytes <= 80 * 1024 * 1024:      # v7x-class: 64 MiB physical VMEM / TC
        budget, vmem_limit = 36 * 1024 * 1024, 48 * 1024 * 1024
    else:                                        # v5e / v6e: 128 MiB physical VMEM
        budget, vmem_limit = 72 * 1024 * 1024, 96 * 1024 * 1024
    bytes_per_elt = 2 * itemsize + 24

    # Class tile: one block when it fits (single-pass kernel); otherwise a
    # multiple-of-128 tile with the online class loop.
    tile_c = num_classes if num_classes <= _MAX_TILE_C else _MAX_TILE_C

    # Batch tile: as many rows as the budget allows (multiple of 8 sublanes),
    # capped so the ("parallel") batch grid has >= 2 steps when B > 8 so both
    # v7x TensorCores get work.
    rows = max(8, budget // (tile_c * bytes_per_elt))
    tile_b = (rows // 8) * 8
    if batch <= 8:
        tile_b = batch                           # full dim, always a legal block
    else:
        b_ceil8 = -(-batch // 8) * 8
        if b_ceil8 >= 16:
            tile_b = min(tile_b, max(8, (b_ceil8 // 16) * 8))
        tile_b = min(tile_b, b_ceil8)
    return tile_b, tile_c, vmem_limit


def smooth_ce_loss(outputs, targets, alpha=1e-06, reduction="mean",
                   tile_b=None, tile_c=None):
    """JAX/Pallas equivalent of smoothCELoss.forward.

    outputs: (B, C) float logits (kept in native dtype; upcast in-register)
    targets: (B,) integer class ids
    Returns (loss_scalar, {'T': loss_scalar}) — jit-friendly, no host sync.
    """
    B, C = outputs.shape
    itemsize = jnp.dtype(outputs.dtype).itemsize

    try:
        vmem_cap = pltpu.get_tpu_info().vmem_capacity_bytes
    except Exception:
        vmem_cap = 64 * 1024 * 1024              # conservative (v7x) fallback

    auto_tb, auto_tc, vmem_limit = _choose_tiles(B, C, itemsize, vmem_cap)
    if tile_b is None:
        tile_b = auto_tb
    else:
        tile_b = B if B <= 8 else min(-(-B // 8) * 8, max(8, (int(tile_b) // 8) * 8))
    if tile_c is None:
        tile_c = auto_tc
    else:
        tile_c = int(tile_c)
        tile_c = C if tile_c >= C else min(C, max(128, (tile_c // 128) * 128))

    grid_b = pl.cdiv(B, tile_b)
    grid_c = pl.cdiv(C, tile_c)
    needs_b_mask = (B % tile_b) != 0             # ragged last batch tile
    needs_c_mask = (C % tile_c) != 0             # ragged last class tile

    targets_2d = targets.astype(jnp.int32).reshape(B, 1)

    kernel = functools.partial(
        _smooth_ce_kernel, alpha=float(alpha), num_classes=C, batch=B,
        grid_c=grid_c, needs_c_mask=needs_c_mask, needs_b_mask=needs_b_mask)

    cost = pl.CostEstimate(
        flops=8 * B * C,
        transcendentals=B * C,
        bytes_accessed=B * C * itemsize + B * 4 + grid_b * 8 * 4)

    tile_sums = pl.pallas_call(
        kernel,
        out_shape=jax.ShapeDtypeStruct((8 * grid_b, 1), jnp.float32),
        grid=(grid_b, grid_c),
        in_specs=[
            pl.BlockSpec((tile_b, tile_c), lambda i, j: (i, j)),
            pl.BlockSpec((tile_b, 1), lambda i, j: (i, 0)),
        ],
        out_specs=pl.BlockSpec((8, 1), lambda i, j: (i, 0)),
        scratch_shapes=[pltpu.VMEM((tile_b, 1), jnp.float32)] * 3,
        compiler_params=pltpu.CompilerParams(
            dimension_semantics=("parallel", "arbitrary"),
            vmem_limit_bytes=vmem_limit,
        ),
        cost_estimate=cost,
    )(outputs, targets_2d)

    loss = jnp.sum(tile_sums)                    # tiny (8*grid_b)-element reduce in XLA
    if reduction == "mean":
        loss = loss / B
    # PyTorch used loss.item(); keep a device scalar here to stay jit-able
    # (callers can float() it outside jit).
    return loss, {"T": loss}


def _reference(outputs, targets, alpha=1e-06, reduction="mean"):
    B, C = outputs.shape
    y_hot = jax.nn.one_hot(targets, C, dtype=jnp.float32)
    y_smooth = (1.0 - alpha) * y_hot + alpha / C
    log_sm = jax.nn.log_softmax(outputs.astype(jnp.float32), axis=-1)
    loss = jnp.sum(jnp.sum(-y_smooth * log_sm, axis=-1))
    if reduction == "mean":
        loss = loss / B
    return loss


if __name__ == "__main__":
    key = jax.random.PRNGKey(0)
    k1, k2, k3, k4, k5, k6 = jax.random.split(key, 6)

    # --- small canonical shape (batch=8, classes=32), f32, jitted, one tile ---
    B, C = 8, 32
    outputs = jax.random.normal(k1, (B, C), dtype=jnp.float32)
    targets = jax.random.randint(k2, (B,), 0, C, dtype=jnp.int32)
    loss_fn = jax.jit(functools.partial(smooth_ce_loss, alpha=1e-06, reduction="mean"))
    loss, info = loss_fn(outputs, targets)
    jax.block_until_ready(loss)
    ref = _reference(outputs, targets, 1e-06, "mean")
    assert jnp.allclose(loss, ref, rtol=1e-5, atol=1e-5), (loss, ref)
    assert isinstance(float(info["T"]), float)       # .item() outside jit

    # --- bf16, ragged batch tail (20 % 8 != 0), multi-step "parallel" grid ---
    B2, C2 = 20, 128
    outputs2 = jax.random.normal(k3, (B2, C2), dtype=jnp.bfloat16)
    targets2 = jax.random.randint(k4, (B2,), 0, C2, dtype=jnp.int32)
    loss2, _ = smooth_ce_loss(outputs2, targets2, alpha=1e-06, reduction="mean",
                              tile_b=8)
    jax.block_until_ready(loss2)
    ref2 = _reference(outputs2, targets2, 1e-06, "mean")
    assert jnp.allclose(loss2, ref2, rtol=1e-4, atol=1e-4), (loss2, ref2)

    # --- class-tiled online-LSE path: grid_c > 1 with ragged class tail ---
    B3, C3 = 16, 300
    outputs3 = jax.random.normal(k5, (B3, C3), dtype=jnp.float32)
    targets3 = jax.random.randint(k6, (B3,), 0, C3, dtype=jnp.int32)
    loss3, _ = smooth_ce_loss(outputs3, targets3, alpha=1e-06, reduction="sum",
                              tile_b=8, tile_c=128)
    jax.block_until_ready(loss3)
    ref3 = _reference(outputs3, targets3, 1e-06, "sum")
    assert jnp.allclose(loss3, ref3, rtol=1e-4, atol=1e-3), (loss3, ref3)

    print("KERNEL_OK")
</pallas_src>

<mosaic_0001>
module attributes {stable_mosaic.version = 11 : i64} {
  func.func @_smooth_ce_kernel(%arg0: i32, %arg1: i32, %arg2: memref<8x32xf32, #tpu.memory_space<vmem>>, %arg3: memref<8x1xi32, #tpu.memory_space<vmem>>, %arg4: memref<8x1xf32, #tpu.memory_space<vmem>>, %arg5: memref<8x1xf32, #tpu.memory_space<vmem>>, %arg6: memref<8x1xf32, #tpu.memory_space<vmem>>, %arg7: memref<8x1xf32, #tpu.memory_space<vmem>>) attributes {dimension_semantics = [#tpu.dimension_semantics<parallel>, #tpu.dimension_semantics<arbitrary>], iteration_bounds = array<i64: 1, 1>, scalar_prefetch = 0 : i64, scratch_operands = 3 : i64, tpu.core_type = #tpu.core_type<tc>, window_params = [{transform_indices = @transform_0, window_bounds = array<i64: 8, 32>}, {transform_indices = @transform_1, window_bounds = array<i64: 8, 1>}, {transform_indices = @transform_2, window_bounds = array<i64: 8, 1>}]} {
    %c0 = arith.constant 0 : index
    %c0_0 = arith.constant 0 : index
    %0 = vector.load %arg2[%c0, %c0_0] : memref<8x32xf32, #tpu.memory_space<vmem>>, vector<8x32xf32>
    %c0_1 = arith.constant 0 : index
    %c0_2 = arith.constant 0 : index
    %1 = vector.load %arg3[%c0_1, %c0_2] : memref<8x1xi32, #tpu.memory_space<vmem>>, vector<8x1xi32>
    %2 = tpu.iota {dimensions = array<i32: 1>} : vector<8x32xi32>
    %c32_i32 = arith.constant 32 : i32
    %3 = arith.muli %arg1, %c32_i32 : i32
    %4 = vector.broadcast %3 : i32 to vector<8x32xi32>
    %5 = arith.addi %2, %4 : vector<8x32xi32>
    %6 = vector.broadcast %1 : vector<8x1xi32> to vector<8x32xi32>
    %7 = arith.cmpi eq, %5, %6 : vector<8x32xi32>
    %cst = arith.constant 0.999999046 : f32
    %cst_3 = arith.constant 3.125000e-08 : f32
    %8 = vector.broadcast %cst : f32 to vector<8x32xf32>
    %9 = vector.broadcast %cst_3 : f32 to vector<8x32xf32>
    %10 = arith.select %7, %8, %9 : vector<8x32xi1>, vector<8x32xf32>
    %cst_4 = arith.constant dense<0xFF800000> : vector<8xf32>
    %11 = vector.multi_reduction <maximumf>, %0, %cst_4 [1] : vector<8x32xf32> to vector<8xf32>
    %12 = vector.shape_cast %11 : vector<8xf32> to vector<8x1xf32>
    %13 = arith.mulf %10, %0 : vector<8x32xf32>
    %cst_5 = arith.constant dense<0.000000e+00> : vector<8xf32>
    %14 = vector.multi_reduction <add>, %13, %cst_5 [1] : vector<8x32xf32> to vector<8xf32>
    %15 = vector.shape_cast %14 : vector<8xf32> to vector<8x1xf32>
    %16 = vector.broadcast %12 : vector<8x1xf32> to vector<8x32xf32>
    %17 = arith.subf %0, %16 : vector<8x32xf32>
    %18 = math.exp %17 : vector<8x32xf32>
    %cst_6 = arith.constant dense<0.000000e+00> : vector<8xf32>
    %19 = vector.multi_reduction <add>, %18, %cst_6 [1] : vector<8x32xf32> to vector<8xf32>
    %20 = vector.shape_cast %19 : vector<8xf32> to vector<8x1xf32>
    %21 = math.log %20 : vector<8x1xf32>
    %22 = arith.addf %12, %21 : vector<8x1xf32>
    %23 = arith.subf %22, %15 : vector<8x1xf32>
    %24 = vector.shape_cast %23 : vector<8x1xf32> to vector<1x8x1xf32>
    %cst_7 = arith.constant dense<0.000000e+00> : vector<1xf32>
    %25 = vector.multi_reduction <add>, %24, %cst_7 [1, 2] : vector<1x8x1xf32> to vector<1xf32>
    %26 = vector.shape_cast %25 : vector<1xf32> to vector<1x1x1xf32>
    %27 = vector.extract %26[0, 0, 0] : f32 from vector<1x1x1xf32>
    %28 = tpu.iota {dimensions = array<i32: 0>} : vector<8x1xi32>
    %c0_i32 = arith.constant 0 : i32
    %29 = vector.broadcast %c0_i32 : i32 to vector<8x1xi32>
    %30 = arith.cmpi eq, %28, %29 : vector<8x1xi32>
    %cst_8 = arith.constant 0.000000e+00 : f32
    %31 = vector.broadcast %27 : f32 to vector<8x1xf32>
    %32 = vector.broadcast %cst_8 : f32 to vector<8x1xf32>
    %33 = arith.select %30, %31, %32 : vector<8x1xi1>, vector<8x1xf32>
    %c0_9 = arith.constant 0 : index
    %c0_10 = arith.constant 0 : index
    %34 = vector.load %arg4[%c0_9, %c0_10] : memref<8x1xf32, #tpu.memory_space<vmem>>, vector<8x1xf32>
    tpu.vector_store %arg4[%c0_9, %c0_10], %33 {strides = array<i32>} : memref<8x1xf32, #tpu.memory_space<vmem>>, vector<8x1xf32>,
    return
  }
  func.func @transform_0(%arg0: i32, %arg1: i32) -> (i32, i32) {
    %c0_i32 = arith.constant 0 : i32
    return %arg0, %arg1 : i32, i32
  }
  func.func @transform_1(%arg0: i32, %arg1: i32) -> (i32, i32) {
    %c0_i32 = arith.constant 0 : i32
    %c0_i32_0 = arith.constant 0 : i32
    return %arg0, %c0_i32 : i32, i32
  }
  func.func @transform_2(%arg0: i32, %arg1: i32) -> (i32, i32) {
    %c0_i32 = arith.constant 0 : i32
    %c0_i32_0 = arith.constant 0 : i32
    return %arg0, %c0_i32 : i32, i32
  }
}

</mosaic_0001>

<bundles_post_ra>
// kernel: smooth_ce_loss.1
= control target key start
LH: loop header
LB: loop body
LE: loop exit
PB: predicated region body
PF: predicated region fallthrough
CT: control target
= control target key end

     0   :  { %vm23_vm0 = vcmask 261120   ;;  %v71_v1 = vmov 0   ;;  %v13_v6 = vlaneseq  ;;  %v72_v10 = vmov 3.125e-08   ;;  %s102_s0 = inlined_call_operand.vmem [shape: f32[8,32], index: 0, kind: input, shape index: {}]   ;;  %s103_s1 = inlined_call_operand.vmem [shape: s32[8,1], index: 1, kind: input, shape index: {}]   ;;  %s104_s2 = inlined_call_operand.vmem [shape: f32[8,1], index: 2, kind: output, shape index: {}]  }
   0x1   :  { %v11_v0 = vld [vmem:[%s102_s0] sm:$0xff]  ;;  %66 = vset.pattern.permute.xlu0 %v71_v1  ;;  %vm41_vm2 = vcmask 7168  }
   0x2   :  { %v24_v2 = vsel %vm23_vm0, %v11_v0, -inf  ;;  %v12_v3 = vld [vmem:[%s103_s1] sm:$0xff]  ;;  %v14_v8 = vand.u32 127, %v13_v6  ;;  %v53_v30 = vshrl.u32 %v13_v6, 7 }
   0x3   :  { %25 = vmax.xlane.f32.xlu0 %v24_v2 }
   0x4   :  { %vm54_vm3 = vcmp.eq.s32.totalorder %v53_v30, 0 }
  0x19   :  { %19 = vperm.xlu0 %66, %v12_v3  }
  0x90   :  { %v26_v4 = vpop.xlane.xlu0 %25 }
  0x91   :  { %v31_v5 = vsub.f32 %v11_v0, %v26_v4 }
  0x93   :  { %v32_v7 = vmul.f32 1.442695, %v31_v5 }
  0x95   :  { %67 = vpow2.f32 %v32_v7 }
  0x98   :  { %v20_v9 = vpop.permute.xlu0 %19 }
  0x99   :  { %vm21_vm1 = vcmp.eq.s32.totalorder %v14_v8, %v20_v9 }
  0x9a   :  { %v22_v11 = vsel %vm21_vm1, 0.99999905, %v72_v10 }
  0x9b   :  { %v27_v12 = vmul.f32 %v22_v11, %v11_v0 }
  0x9d   :  { %v28_v15 = vsel %vm23_vm0, %v27_v12, 0.0 }
  0x9f   :  { %v68_v13 = vpop.eup %67 }
  0xa0   :  { %v34_v14 = vsel %vm23_vm0, %v68_v13, 0.0 }
  0xa1   :  { %35 = vadd.xlane.f32.xlu1 %v34_v14 }
  0xa5   :  { %29 = vadd.xlane.f32.xlu1 %v28_v15 }
 0x12e   :  { %v36_v16 = vpop.xlane.xlu1 %35 }
 0x12f   :  { %69 = vlog2.f32 %v36_v16 }
 0x132   :  { %v30_v19 = vpop.xlane.xlu1 %29 }
 0x139   :  { %v70_v17 = vpop.eup %69 }
 0x13a   :  { %v38_v18 = vmul.f32 0.6931472, %v70_v17 }
 0x13c   :  { %v39_v20 = vadd.f32 %v38_v18, %v26_v4 }
 0x13e   :  { %v40_v21 = vsub.f32 %v39_v20, %v30_v19 }
 0x140   :  { %v42_v22 = vsel %vm41_vm2, %v40_v21, 0.0 }
 0x141   :  { %43 = vadd.xlane.f32.xlu1 %v42_v22 }
 0x1ce   :  { %v44_v23 = vpop.xlane.xlu1 %43 }
 0x1cf   :  { %v45_v24 = vrot.slane %v44_v23, 4 }
 0x1d1   :  { %v46_v25 = vadd.f32 %v45_v24, %v44_v23 }
 0x1d3   :  { %v47_v26 = vrot.slane %v46_v25, 2 }
 0x1d5   :  { %v48_v27 = vadd.f32 %v47_v26, %v46_v25 }
 0x1d7   :  { %v49_v28 = vrot.slane %v48_v27, 1 }
 0x1d9   :  { %v50_v29 = vadd.f32 %v49_v28, %v48_v27 }
 0x1db   :  { %62 = vpush %v50_v29 }
 0x20c   :  { %s63_s0 = spop %62 }
 0x20d   :  { %v55_v31 = vstv %s63_s0 }
 0x20e   :  { %v56_v32 = vsel %vm54_vm3, %v55_v31, 0.0 }
 0x20f   :  { %57 = vst.msk [vmem:[%s104_s2] sm:$0xff] %vm41_vm2, %v56_v32 }

</bundles_post_ra>
